<compile_context>
chip_gen: v7x
topology: tpu7x:2x2x1
jax: 0.10.0
libtpu: 0.0.40
codegen_flags: <defaults>
</compile_context>

<pallas_src>
import inspect

import jax
import jax.numpy as jnp
from jax.experimental import pallas as pl
from jax.experimental.pallas import tpu as pltpu


def _silu(x):
    return x * jax.nn.sigmoid(x)


def _round_up(v, m):
    return ((v + m - 1) // m) * m


def _num_tensorcores():
    """Best-effort TensorCores-per-device query (used only for small-E split)."""
    try:
        dev = jax.devices()[0]
        for attr in ("num_cores", "core_count"):
            v = getattr(dev, attr, None)
            if isinstance(v, int) and v > 0:
                return v
    except Exception:
        pass
    return 1


def _vmem_capacity_bytes():
    get_info = getattr(pltpu, "get_tpu_info", None)
    if get_info is not None:
        try:
            cap = getattr(get_info(), "vmem_capacity_bytes", None)
            if cap:
                return int(cap)
        except Exception:
            pass
    return 64 * 1024 * 1024  # conservative default (v7x per-core VMEM)


def _supports_single_buffered_weights():
    """Narrow feature detection for pipeline_mode=pl.Buffered(1)."""
    if not hasattr(pl, "Buffered"):
        return False
    try:
        return "pipeline_mode" in inspect.signature(pl.BlockSpec).parameters
    except (TypeError, ValueError):
        return False


_SINGLE_BUFFER_WEIGHTS = _supports_single_buffered_weights()


def _weight_spec(shape):
    """Resident (constant-index) weight spec; single-buffered when supported."""
    if _SINGLE_BUFFER_WEIGHTS:
        return pl.BlockSpec(shape, lambda i: (0, 0), pipeline_mode=pl.Buffered(1))
    return pl.BlockSpec(shape, lambda i: (0, 0))


def _make_kernel(n_edge_layers: int, has_attr: bool):
    """Ref order:
         xs, xd, [attr], rel,
         w0_src, w0_dst, [w0_attr], b0,          # edge_mlp layer 0 (split K)
         (w_i, b_i) for i in 1..n_edge_layers-1, # remaining edge_mlp layers
         cw1, cb1, cw2_T, cb2,                   # coord_mlp
         feat_out, coord_out                     # outputs
    """

    def kernel(*refs):
        pos = 0
        xs = refs[pos][...]; pos += 1                       # f32 [te, nd]
        xd = refs[pos][...]; pos += 1                       # f32 [te, nd]
        if has_attr:
            attr = refs[pos][...]; pos += 1                 # f32 [te, ed]
        rel = refs[pos][...]; pos += 1                      # f32 [te, 3]

        # ---- edge MLP: layer 0 consumes the (virtual) concat directly -------
        acc = jnp.dot(xs.astype(jnp.bfloat16), refs[pos][...],
                      preferred_element_type=jnp.float32); pos += 1
        acc = acc + jnp.dot(xd.astype(jnp.bfloat16), refs[pos][...],
                            preferred_element_type=jnp.float32); pos += 1
        if has_attr:
            acc = acc + jnp.dot(attr.astype(jnp.bfloat16), refs[pos][...],
                                preferred_element_type=jnp.float32); pos += 1
        h = acc + refs[pos][...]; pos += 1                  # + b0 (f32)

        # SiLU after every layer except the last one (matches nn.Sequential).
        for _ in range(1, n_edge_layers):
            h = _silu(h).astype(jnp.bfloat16)
            w = refs[pos][...]; b = refs[pos + 1][...]; pos += 2
            h = jnp.dot(h, w, preferred_element_type=jnp.float32) + b

        # ---- coord MLP (exact f32: VPU broadcast MACs + XLU reductions) -----
        cw1 = refs[pos][...]                                # f32 [3, Hc]
        cb1 = refs[pos + 1][...]                            # f32 [1, Hc]
        cw2t = refs[pos + 2][...]                           # f32 [3, Hc]
        cb2 = refs[pos + 3][...]                            # f32 [1, 3]
        pos += 4
        feat_out = refs[pos]
        coord_out = refs[pos + 1]

        c = (cb1
             + rel[:, 0:1] * cw1[0:1, :]
             + rel[:, 1:2] * cw1[1:2, :]
             + rel[:, 2:3] * cw1[2:3, :])
        c = _silu(c)

        feat_out[...] = h.astype(feat_out.dtype)
        for j in range(3):                                  # Linear(Hc, 3)
            col = jnp.sum(c * cw2t[j:j + 1, :], axis=-1, keepdims=True)
            coord_out[:, j:j + 1] = col + cb2[:, j:j + 1]

    return kernel


def init_params(key, node_dim, edge_dim, hidden_dim, granularity="atom"):
    """Deterministic parameter init matching nn.Linear default ranges."""
    input_dim = node_dim * 2 + (edge_dim if edge_dim > 0 else 0)
    if granularity == "residue":
        dims = [input_dim, hidden_dim * 3, hidden_dim * 2, hidden_dim, hidden_dim]
    else:
        dims = [input_dim, hidden_dim * 2, hidden_dim, hidden_dim]

    def linear(key, fan_in, fan_out):
        k1, k2 = jax.random.split(key)
        bound = 1.0 / (fan_in ** 0.5)
        w = jax.random.uniform(k1, (fan_in, fan_out), jnp.float32, -bound, bound)
        b = jax.random.uniform(k2, (fan_out,), jnp.float32, -bound, bound)
        return w, b

    edge_layers = []
    for i in range(len(dims) - 1):
        key, sub = jax.random.split(key)
        edge_layers.append(linear(sub, dims[i], dims[i + 1]))

    coord_dims = [3, hidden_dim, 3]
    coord_layers = []
    for i in range(2):
        key, sub = jax.random.split(key)
        coord_layers.append(linear(sub, coord_dims[i], coord_dims[i + 1]))

    return {"edge": edge_layers, "coord": coord_layers}


def enhanced_edge_embedding(node_features, node_coords, edge_index, params,
                            edge_attr=None, tile_e=1024):
    """Forward pass equivalent to EnhancedEdgeEmbedding.forward.

    Returns:
      edge_features: [E, hidden_dim] float32
      edge_coords:   [E, 3]          float32
    """
    src = edge_index[0]
    dst = edge_index[1]
    hidden_dim = int(params["edge"][-1][0].shape[1])
    E = int(src.shape[0])
    if E == 0:                                   # degenerate grid guard
        return (jnp.zeros((0, hidden_dim), jnp.float32),
                jnp.zeros((0, 3), jnp.float32))

    nd = int(node_features.shape[1])
    has_attr = edge_attr is not None
    ed = int(edge_attr.shape[1]) if has_attr else 0

    # Per-edge streams at natural width; the concat is folded into the first
    # edge-MLP layer inside the kernel (split weight), so no [E, in_dim]
    # concatenated / padded / re-cast tensor is ever materialised in HBM.
    xs = node_features[src].astype(jnp.float32)
    xd = node_features[dst].astype(jnp.float32)
    rel = (node_coords[dst] - node_coords[src]).astype(jnp.float32)

    # --- edge tiling ----------------------------------------------------------
    num_cores = _num_tensorcores()
    tile_e = max(8, _round_up(int(tile_e), 8))
    e8 = _round_up(E, 8)
    if e8 <= tile_e:
        if num_cores >= 2 and e8 >= 16:
            te = _round_up(-(-e8 // 2), 8)       # give both TensorCores work
        else:
            te = e8                              # single TC: no pointless split
    else:
        te = tile_e
    grid = (pl.cdiv(E, te),)                     # ragged last block is masked

    # --- weights: bf16 on the MXU (f32 accumulate); first layer split on K ---
    n_edge_layers = len(params["edge"])
    w0, b0 = params["edge"][0]
    assert int(w0.shape[0]) == 2 * nd + ed, "edge_mlp input dim mismatch"
    weight_args = [w0[:nd].astype(jnp.bfloat16),
                   w0[nd:2 * nd].astype(jnp.bfloat16)]
    if has_attr:
        weight_args.append(w0[2 * nd:].astype(jnp.bfloat16))
    weight_args.append(b0.reshape(1, -1).astype(jnp.float32))
    for w, b in params["edge"][1:]:
        weight_args.append(w.astype(jnp.bfloat16))
        weight_args.append(b.reshape(1, -1).astype(jnp.float32))

    (cw1, cb1), (cw2, cb2) = params["coord"]
    hc = int(cw1.shape[1])
    weight_args.extend([
        cw1.astype(jnp.float32),                 # [3, Hc]
        cb1.reshape(1, -1).astype(jnp.float32),  # [1, Hc]
        cw2.T.astype(jnp.float32),               # [3, Hc] (transposed)
        cb2.reshape(1, -1).astype(jnp.float32),  # [1, 3]
    ])

    # --- specs ----------------------------------------------------------------
    inputs = [xs, xd] + ([edge_attr.astype(jnp.float32)] if has_attr else []) + [rel]
    in_specs = [pl.BlockSpec((te, nd), lambda i: (i, 0)),
                pl.BlockSpec((te, nd), lambda i: (i, 0))]
    if has_attr:
        in_specs.append(pl.BlockSpec((te, ed), lambda i: (i, 0)))
    in_specs.append(pl.BlockSpec((te, 3), lambda i: (i, 0)))
    in_specs += [_weight_spec(tuple(a.shape)) for a in weight_args]

    out_specs = (pl.BlockSpec((te, hidden_dim), lambda i: (i, 0)),
                 pl.BlockSpec((te, 3), lambda i: (i, 0)))
    out_shape = (jax.ShapeDtypeStruct((E, hidden_dim), jnp.float32),
                 jax.ShapeDtypeStruct((E, 3), jnp.float32))

    # --- VMEM budget: resident weights (x1 or x2) + double-buffered tiles -----
    weight_bytes = sum(int(a.size) * a.dtype.itemsize for a in weight_args)
    wfac = 1 if _SINGLE_BUFFER_WEIGHTS else 2
    in_tile_bytes = te * (2 * nd + ed + 3) * 4
    out_tile_bytes = te * (hidden_dim + 3) * 4
    widths = [int(w.shape[1]) for (w, _) in params["edge"]] + [hc]
    inter_bytes = 3 * te * max(widths) * 4       # rough activation temporaries
    needed = (wfac * weight_bytes + 2 * (in_tile_bytes + out_tile_bytes)
              + inter_bytes + 8 * 1024 * 1024)   # headroom for Mosaic scratch
    usable = max(_vmem_capacity_bytes() - 16 * 1024 * 1024, 24 * 1024 * 1024)
    vmem_limit = int(min(max(needed, 32 * 1024 * 1024), usable))

    # --- advisory cost estimate ------------------------------------------------
    edge_flops = 2 * E * sum(int(w.shape[0]) * int(w.shape[1])
                             for (w, _) in params["edge"])
    coord_flops = 2 * E * (3 * hc + hc * 3)
    trans = E * (sum(int(w.shape[1]) for (w, _) in params["edge"][:-1]) + hc)
    bytes_accessed = (E * (2 * nd + ed + 3) * 4 + weight_bytes
                      + E * (hidden_dim + 3) * 4)
    cost = pl.CostEstimate(flops=int(edge_flops + coord_flops),
                           transcendentals=int(trans),
                           bytes_accessed=int(bytes_accessed))

    kernel = _make_kernel(n_edge_layers, has_attr)

    feat, coords = pl.pallas_call(
        kernel,
        out_shape=out_shape,
        grid=grid,
        in_specs=in_specs,
        out_specs=out_specs,
        compiler_params=pltpu.CompilerParams(
            dimension_semantics=("parallel",),
            vmem_limit_bytes=vmem_limit),
        cost_estimate=cost,
    )(*inputs, *weight_args)

    return feat, coords


def _reference_forward(node_features, node_coords, edge_index, params, edge_attr=None):
    """Pure-JAX reference (HIGHEST precision so it is a true f32 baseline)."""
    hp = jax.lax.Precision.HIGHEST
    src, dst = edge_index[0], edge_index[1]
    x = jnp.concatenate([node_features[src], node_features[dst]], axis=1)
    if edge_attr is not None:
        x = jnp.concatenate([x, edge_attr], axis=1)
    h = x
    n = len(params["edge"])
    for li, (w, b) in enumerate(params["edge"]):
        h = jnp.dot(h, w, precision=hp) + b
        if li < n - 1:
            h = _silu(h)
    rel = node_coords[dst] - node_coords[src]
    (cw1, cb1), (cw2, cb2) = params["coord"]
    c = jnp.dot(_silu(jnp.dot(rel, cw1, precision=hp) + cb1), cw2, precision=hp) + cb2
    return h, c


if __name__ == "__main__":
    key = jax.random.PRNGKey(0)

    # Small shapes consistent with the module's forward signature.
    N = 12          # number of nodes
    E = 24          # number of edges
    node_dim = 16
    edge_dim = 8
    hidden_dim = 32
    granularity = "atom"

    kp, kf, kc, ke, ka = jax.random.split(key, 5)
    params = init_params(kp, node_dim, edge_dim, hidden_dim, granularity)

    node_features = jax.random.normal(kf, (N, node_dim), jnp.float32)
    node_coords = jax.random.normal(kc, (N, 3), jnp.float32)
    edge_index = jax.random.randint(ke, (2, E), 0, N, dtype=jnp.int32)
    edge_attr = jax.random.normal(ka, (E, edge_dim), jnp.float32)

    edge_feat, edge_coords = enhanced_edge_embedding(
        node_features, node_coords, edge_index, params, edge_attr=edge_attr)
    jax.block_until_ready((edge_feat, edge_coords))

    # Sanity-check against a pure-JAX f32 reference.
    ref_feat, ref_coords = _reference_forward(
        node_features, node_coords, edge_index, params, edge_attr=edge_attr)
    assert edge_feat.shape == (E, hidden_dim)
    assert edge_coords.shape == (E, 3)
    assert bool(jnp.all(jnp.isfinite(edge_feat)))
    assert bool(jnp.all(jnp.isfinite(edge_coords)))
    # Edge MLP runs in bf16 (f32 accumulation) -> looser tolerance there.
    assert jnp.allclose(edge_feat, ref_feat, atol=5e-2, rtol=5e-2)
    # Coord MLP runs fully in f32 (VPU MACs + XLU reductions) -> tight tolerance.
    assert jnp.allclose(edge_coords, ref_coords, atol=1e-3, rtol=1e-3)

    print("KERNEL_OK")
</pallas_src>

<mosaic_0001>
module attributes {stable_mosaic.version = 11 : i64} {
  func.func @kernel(%arg0: i32, %arg1: memref<24x16xf32, #tpu.memory_space<vmem>>, %arg2: memref<24x16xf32, #tpu.memory_space<vmem>>, %arg3: memref<24x8xf32, #tpu.memory_space<vmem>>, %arg4: memref<24x3xf32, #tpu.memory_space<vmem>>, %arg5: memref<16x64xbf16, #tpu.memory_space<vmem>>, %arg6: memref<16x64xbf16, #tpu.memory_space<vmem>>, %arg7: memref<8x64xbf16, #tpu.memory_space<vmem>>, %arg8: memref<1x64xf32, #tpu.memory_space<vmem>>, %arg9: memref<64x32xbf16, #tpu.memory_space<vmem>>, %arg10: memref<1x32xf32, #tpu.memory_space<vmem>>, %arg11: memref<32x32xbf16, #tpu.memory_space<vmem>>, %arg12: memref<1x32xf32, #tpu.memory_space<vmem>>, %arg13: memref<3x32xf32, #tpu.memory_space<vmem>>, %arg14: memref<1x32xf32, #tpu.memory_space<vmem>>, %arg15: memref<3x32xf32, #tpu.memory_space<vmem>>, %arg16: memref<1x3xf32, #tpu.memory_space<vmem>>, %arg17: memref<24x32xf32, #tpu.memory_space<vmem>>, %arg18: memref<24x3xf32, #tpu.memory_space<vmem>>) attributes {dimension_semantics = [#tpu.dimension_semantics<parallel>], iteration_bounds = array<i64: 1>, scalar_prefetch = 0 : i64, scratch_operands = 0 : i64, tpu.core_type = #tpu.core_type<tc>, window_params = [{transform_indices = @transform_0, window_bounds = array<i64: 24, 16>}, {transform_indices = @transform_1, window_bounds = array<i64: 24, 16>}, {transform_indices = @transform_2, window_bounds = array<i64: 24, 8>}, {transform_indices = @transform_3, window_bounds = array<i64: 24, 3>}, {pipeline_mode = #tpu.pipeline_mode<synchronous>, transform_indices = @transform_4, window_bounds = array<i64: 16, 64>}, {pipeline_mode = #tpu.pipeline_mode<synchronous>, transform_indices = @transform_5, window_bounds = array<i64: 16, 64>}, {pipeline_mode = #tpu.pipeline_mode<synchronous>, transform_indices = @transform_6, window_bounds = array<i64: 8, 64>}, {pipeline_mode = #tpu.pipeline_mode<synchronous>, transform_indices = @transform_7, window_bounds = array<i64: 1, 64>}, {pipeline_mode = #tpu.pipeline_mode<synchronous>, transform_indices = @transform_8, window_bounds = array<i64: 64, 32>}, {pipeline_mode = #tpu.pipeline_mode<synchronous>, transform_indices = @transform_9, window_bounds = array<i64: 1, 32>}, {pipeline_mode = #tpu.pipeline_mode<synchronous>, transform_indices = @transform_10, window_bounds = array<i64: 32, 32>}, {pipeline_mode = #tpu.pipeline_mode<synchronous>, transform_indices = @transform_11, window_bounds = array<i64: 1, 32>}, {pipeline_mode = #tpu.pipeline_mode<synchronous>, transform_indices = @transform_12, window_bounds = array<i64: 3, 32>}, {pipeline_mode = #tpu.pipeline_mode<synchronous>, transform_indices = @transform_13, window_bounds = array<i64: 1, 32>}, {pipeline_mode = #tpu.pipeline_mode<synchronous>, transform_indices = @transform_14, window_bounds = array<i64: 3, 32>}, {pipeline_mode = #tpu.pipeline_mode<synchronous>, transform_indices = @transform_15, window_bounds = array<i64: 1, 3>}, {transform_indices = @transform_16, window_bounds = array<i64: 24, 32>}, {transform_indices = @transform_17, window_bounds = array<i64: 24, 3>}]} {
    %c0 = arith.constant 0 : index
    %c0_0 = arith.constant 0 : index
    %0 = vector.load %arg1[%c0, %c0_0] : memref<24x16xf32, #tpu.memory_space<vmem>>, vector<24x16xf32>
    %c0_1 = arith.constant 0 : index
    %c0_2 = arith.constant 0 : index
    %1 = vector.load %arg2[%c0_1, %c0_2] : memref<24x16xf32, #tpu.memory_space<vmem>>, vector<24x16xf32>
    %c0_3 = arith.constant 0 : index
    %c0_4 = arith.constant 0 : index
    %2 = vector.load %arg3[%c0_3, %c0_4] : memref<24x8xf32, #tpu.memory_space<vmem>>, vector<24x8xf32>
    %c0_5 = arith.constant 0 : index
    %c0_6 = arith.constant 0 : index
    %3 = vector.load %arg4[%c0_5, %c0_6] : memref<24x3xf32, #tpu.memory_space<vmem>>, vector<24x3xf32>
    %4 = arith.truncf %0 : vector<24x16xf32> to vector<24x16xbf16>
    %c0_7 = arith.constant 0 : index
    %c0_8 = arith.constant 0 : index
    %5 = vector.load %arg5[%c0_7, %c0_8] : memref<16x64xbf16, #tpu.memory_space<vmem>>, vector<16x64xbf16>
    %cst = arith.constant dense<0.000000e+00> : vector<24x64xf32>
    %6 = tpu.matmul %4, %5, %cst {dimension_numbers = #tpu.dot_dimension_numbers<[1], [0], [0], [1], [0, 0, 1, 1], [], []>} : vector<24x16xbf16>, vector<16x64xbf16>, vector<24x64xf32> -> vector<24x64xf32>
    %7 = arith.truncf %1 : vector<24x16xf32> to vector<24x16xbf16>
    %c0_9 = arith.constant 0 : index
    %c0_10 = arith.constant 0 : index
    %8 = vector.load %arg6[%c0_9, %c0_10] : memref<16x64xbf16, #tpu.memory_space<vmem>>, vector<16x64xbf16>
    %cst_11 = arith.constant dense<0.000000e+00> : vector<24x64xf32>
    %9 = tpu.matmul %7, %8, %cst_11 {dimension_numbers = #tpu.dot_dimension_numbers<[1], [0], [0], [1], [0, 0, 1, 1], [], []>} : vector<24x16xbf16>, vector<16x64xbf16>, vector<24x64xf32> -> vector<24x64xf32>
    %10 = arith.addf %6, %9 : vector<24x64xf32>
    %11 = arith.truncf %2 : vector<24x8xf32> to vector<24x8xbf16>
    %c0_12 = arith.constant 0 : index
    %c0_13 = arith.constant 0 : index
    %12 = vector.load %arg7[%c0_12, %c0_13] : memref<8x64xbf16, #tpu.memory_space<vmem>>, vector<8x64xbf16>
    %cst_14 = arith.constant dense<0.000000e+00> : vector<24x64xf32>
    %13 = tpu.matmul %11, %12, %cst_14 {dimension_numbers = #tpu.dot_dimension_numbers<[1], [0], [0], [1], [0, 0, 1, 1], [], []>} : vector<24x8xbf16>, vector<8x64xbf16>, vector<24x64xf32> -> vector<24x64xf32>
    %14 = arith.addf %10, %13 : vector<24x64xf32>
    %c0_15 = arith.constant 0 : index
    %c0_16 = arith.constant 0 : index
    %15 = vector.load %arg8[%c0_15, %c0_16] : memref<1x64xf32, #tpu.memory_space<vmem>>, vector<1x64xf32>
    %16 = vector.broadcast %15 : vector<1x64xf32> to vector<24x64xf32>
    %17 = arith.addf %14, %16 : vector<24x64xf32>
    %18 = arith.negf %17 : vector<24x64xf32>
    %19 = math.exp %18 : vector<24x64xf32>
    %cst_17 = arith.constant 1.000000e+00 : f32
    %20 = vector.broadcast %cst_17 : f32 to vector<24x64xf32>
    %21 = arith.addf %20, %19 : vector<24x64xf32>
    %22 = arith.divf %20, %21 : vector<24x64xf32>
    %23 = arith.mulf %17, %22 : vector<24x64xf32>
    %24 = arith.truncf %23 : vector<24x64xf32> to vector<24x64xbf16>
    %c0_18 = arith.constant 0 : index
    %c0_19 = arith.constant 0 : index
    %25 = vector.load %arg9[%c0_18, %c0_19] : memref<64x32xbf16, #tpu.memory_space<vmem>>, vector<64x32xbf16>
    %c0_20 = arith.constant 0 : index
    %c0_21 = arith.constant 0 : index
    %26 = vector.load %arg10[%c0_20, %c0_21] : memref<1x32xf32, #tpu.memory_space<vmem>>, vector<1x32xf32>
    %cst_22 = arith.constant dense<0.000000e+00> : vector<24x32xf32>
    %27 = tpu.matmul %24, %25, %cst_22 {dimension_numbers = #tpu.dot_dimension_numbers<[1], [0], [0], [1], [0, 0, 1, 1], [], []>} : vector<24x64xbf16>, vector<64x32xbf16>, vector<24x32xf32> -> vector<24x32xf32>
    %28 = vector.broadcast %26 : vector<1x32xf32> to vector<24x32xf32>
    %29 = arith.addf %27, %28 : vector<24x32xf32>
    %30 = arith.negf %29 : vector<24x32xf32>
    %31 = math.exp %30 : vector<24x32xf32>
    %cst_23 = arith.constant 1.000000e+00 : f32
    %32 = vector.broadcast %cst_23 : f32 to vector<24x32xf32>
    %33 = arith.addf %32, %31 : vector<24x32xf32>
    %34 = arith.divf %32, %33 : vector<24x32xf32>
    %35 = arith.mulf %29, %34 : vector<24x32xf32>
    %36 = arith.truncf %35 : vector<24x32xf32> to vector<24x32xbf16>
    %c0_24 = arith.constant 0 : index
    %c0_25 = arith.constant 0 : index
    %37 = vector.load %arg11[%c0_24, %c0_25] : memref<32x32xbf16, #tpu.memory_space<vmem>>, vector<32x32xbf16>
    %c0_26 = arith.constant 0 : index
    %c0_27 = arith.constant 0 : index
    %38 = vector.load %arg12[%c0_26, %c0_27] : memref<1x32xf32, #tpu.memory_space<vmem>>, vector<1x32xf32>
    %cst_28 = arith.constant dense<0.000000e+00> : vector<24x32xf32>
    %39 = tpu.matmul %36, %37, %cst_28 {dimension_numbers = #tpu.dot_dimension_numbers<[1], [0], [0], [1], [0, 0, 1, 1], [], []>} : vector<24x32xbf16>, vector<32x32xbf16>, vector<24x32xf32> -> vector<24x32xf32>
    %40 = vector.broadcast %38 : vector<1x32xf32> to vector<24x32xf32>
    %41 = arith.addf %39, %40 : vector<24x32xf32>
    %c0_29 = arith.constant 0 : index
    %c0_30 = arith.constant 0 : index
    %42 = vector.load %arg13[%c0_29, %c0_30] : memref<3x32xf32, #tpu.memory_space<vmem>>, vector<3x32xf32>
    %c0_31 = arith.constant 0 : index
    %c0_32 = arith.constant 0 : index
    %43 = vector.load %arg14[%c0_31, %c0_32] : memref<1x32xf32, #tpu.memory_space<vmem>>, vector<1x32xf32>
    %c0_33 = arith.constant 0 : index
    %c0_34 = arith.constant 0 : index
    %44 = vector.load %arg15[%c0_33, %c0_34] : memref<3x32xf32, #tpu.memory_space<vmem>>, vector<3x32xf32>
    %c0_35 = arith.constant 0 : index
    %c0_36 = arith.constant 0 : index
    %45 = vector.load %arg16[%c0_35, %c0_36] : memref<1x3xf32, #tpu.memory_space<vmem>>, vector<1x3xf32>
    %46 = vector.extract_strided_slice %3 {offsets = [0, 0], sizes = [24, 1], strides = [1, 1]} : vector<24x3xf32> to vector<24x1xf32>
    %47 = vector.extract_strided_slice %42 {offsets = [0, 0], sizes = [1, 32], strides = [1, 1]} : vector<3x32xf32> to vector<1x32xf32>
    %48 = vector.broadcast %46 : vector<24x1xf32> to vector<24x32xf32>
    %49 = vector.broadcast %47 : vector<1x32xf32> to vector<24x32xf32>
    %50 = arith.mulf %48, %49 : vector<24x32xf32>
    %51 = vector.broadcast %43 : vector<1x32xf32> to vector<24x32xf32>
    %52 = arith.addf %51, %50 : vector<24x32xf32>
    %53 = vector.extract_strided_slice %3 {offsets = [0, 1], sizes = [24, 1], strides = [1, 1]} : vector<24x3xf32> to vector<24x1xf32>
    %54 = vector.extract_strided_slice %42 {offsets = [1, 0], sizes = [1, 32], strides = [1, 1]} : vector<3x32xf32> to vector<1x32xf32>
    %55 = vector.broadcast %53 : vector<24x1xf32> to vector<24x32xf32>
    %56 = vector.broadcast %54 : vector<1x32xf32> to vector<24x32xf32>
    %57 = arith.mulf %55, %56 : vector<24x32xf32>
    %58 = arith.addf %52, %57 : vector<24x32xf32>
    %59 = vector.extract_strided_slice %3 {offsets = [0, 2], sizes = [24, 1], strides = [1, 1]} : vector<24x3xf32> to vector<24x1xf32>
    %60 = vector.extract_strided_slice %42 {offsets = [2, 0], sizes = [1, 32], strides = [1, 1]} : vector<3x32xf32> to vector<1x32xf32>
    %61 = vector.broadcast %59 : vector<24x1xf32> to vector<24x32xf32>
    %62 = vector.broadcast %60 : vector<1x32xf32> to vector<24x32xf32>
    %63 = arith.mulf %61, %62 : vector<24x32xf32>
    %64 = arith.addf %58, %63 : vector<24x32xf32>
    %65 = arith.negf %64 : vector<24x32xf32>
    %66 = math.exp %65 : vector<24x32xf32>
    %cst_37 = arith.constant 1.000000e+00 : f32
    %67 = vector.broadcast %cst_37 : f32 to vector<24x32xf32>
    %68 = arith.addf %67, %66 : vector<24x32xf32>
    %69 = arith.divf %67, %68 : vector<24x32xf32>
    %70 = arith.mulf %64, %69 : vector<24x32xf32>
    %c0_38 = arith.constant 0 : index
    %c0_39 = arith.constant 0 : index
    %71 = vector.load %arg17[%c0_38, %c0_39] : memref<24x32xf32, #tpu.memory_space<vmem>>, vector<24x32xf32>
    tpu.vector_store %arg17[%c0_38, %c0_39], %41 {strides = array<i32>} : memref<24x32xf32, #tpu.memory_space<vmem>>, vector<24x32xf32>,
    %72 = vector.extract_strided_slice %44 {offsets = [0, 0], sizes = [1, 32], strides = [1, 1]} : vector<3x32xf32> to vector<1x32xf32>
    %73 = vector.broadcast %72 : vector<1x32xf32> to vector<24x32xf32>
    %74 = arith.mulf %70, %73 : vector<24x32xf32>
    %cst_40 = arith.constant dense<0.000000e+00> : vector<24xf32>
    %75 = vector.multi_reduction <add>, %74, %cst_40 [1] : vector<24x32xf32> to vector<24xf32>
    %76 = vector.shape_cast %75 : vector<24xf32> to vector<24x1xf32>
    %77 = vector.extract_strided_slice %45 {offsets = [0, 0], sizes = [1, 1], strides = [1, 1]} : vector<1x3xf32> to vector<1x1xf32>
    %78 = vector.broadcast %77 : vector<1x1xf32> to vector<24x1xf32>
    %79 = arith.addf %76, %78 : vector<24x1xf32>
    %c0_41 = arith.constant 0 : index
    %c0_42 = arith.constant 0 : index
    %80 = vector.load %arg18[%c0_41, %c0_42] : memref<24x3xf32, #tpu.memory_space<vmem>>, vector<24x1xf32>
    tpu.vector_store %arg18[%c0_41, %c0_42], %79 {strides = array<i32>} : memref<24x3xf32, #tpu.memory_space<vmem>>, vector<24x1xf32>,
    %81 = vector.extract_strided_slice %44 {offsets = [1, 0], sizes = [1, 32], strides = [1, 1]} : vector<3x32xf32> to vector<1x32xf32>
    %82 = vector.broadcast %81 : vector<1x32xf32> to vector<24x32xf32>
    %83 = arith.mulf %70, %82 : vector<24x32xf32>
    %cst_43 = arith.constant dense<0.000000e+00> : vector<24xf32>
    %84 = vector.multi_reduction <add>, %83, %cst_43 [1] : vector<24x32xf32> to vector<24xf32>
    %85 = vector.shape_cast %84 : vector<24xf32> to vector<24x1xf32>
    %86 = vector.extract_strided_slice %45 {offsets = [0, 1], sizes = [1, 1], strides = [1, 1]} : vector<1x3xf32> to vector<1x1xf32>
    %87 = vector.broadcast %86 : vector<1x1xf32> to vector<24x1xf32>
    %88 = arith.addf %85, %87 : vector<24x1xf32>
    %c0_44 = arith.constant 0 : index
    %c1 = arith.constant 1 : index
    %89 = vector.load %arg18[%c0_44, %c1] : memref<24x3xf32, #tpu.memory_space<vmem>>, vector<24x1xf32>
    tpu.vector_store %arg18[%c0_44, %c1], %88 {strides = array<i32>} : memref<24x3xf32, #tpu.memory_space<vmem>>, vector<24x1xf32>,
    %90 = vector.extract_strided_slice %44 {offsets = [2, 0], sizes = [1, 32], strides = [1, 1]} : vector<3x32xf32> to vector<1x32xf32>
    %91 = vector.broadcast %90 : vector<1x32xf32> to vector<24x32xf32>
    %92 = arith.mulf %70, %91 : vector<24x32xf32>
    %cst_45 = arith.constant dense<0.000000e+00> : vector<24xf32>
    %93 = vector.multi_reduction <add>, %92, %cst_45 [1] : vector<24x32xf32> to vector<24xf32>
    %94 = vector.shape_cast %93 : vector<24xf32> to vector<24x1xf32>
    %95 = vector.extract_strided_slice %45 {offsets = [0, 2], sizes = [1, 1], strides = [1, 1]} : vector<1x3xf32> to vector<1x1xf32>
    %96 = vector.broadcast %95 : vector<1x1xf32> to vector<24x1xf32>
    %97 = arith.addf %94, %96 : vector<24x1xf32>
    %c0_46 = arith.constant 0 : index
    %c2 = arith.constant 2 : index
    %98 = vector.load %arg18[%c0_46, %c2] : memref<24x3xf32, #tpu.memory_space<vmem>>, vector<24x1xf32>
    tpu.vector_store %arg18[%c0_46, %c2], %97 {strides = array<i32>} : memref<24x3xf32, #tpu.memory_space<vmem>>, vector<24x1xf32>,
    return
  }
  func.func @transform_0(%arg0: i32) -> (i32, i32) {
    %c0_i32 = arith.constant 0 : i32
    %c0_i32_0 = arith.constant 0 : i32
    return %arg0, %c0_i32 : i32, i32
  }
  func.func @transform_1(%arg0: i32) -> (i32, i32) {
    %c0_i32 = arith.constant 0 : i32
    %c0_i32_0 = arith.constant 0 : i32
    return %arg0, %c0_i32 : i32, i32
  }
  func.func @transform_2(%arg0: i32) -> (i32, i32) {
    %c0_i32 = arith.constant 0 : i32
    %c0_i32_0 = arith.constant 0 : i32
    return %arg0, %c0_i32 : i32, i32
  }
  func.func @transform_3(%arg0: i32) -> (i32, i32) {
    %c0_i32 = arith.constant 0 : i32
    %c0_i32_0 = arith.constant 0 : i32
    return %arg0, %c0_i32 : i32, i32
  }
  func.func @transform_4(%arg0: i32) -> (i32, i32) {
    %c0_i32 = arith.constant 0 : i32
    %c0_i32_0 = arith.constant 0 : i32
    %c0_i32_1 = arith.constant 0 : i32
    return %c0_i32, %c0_i32_0 : i32, i32
  }
  func.func @transform_5(%arg0: i32) -> (i32, i32) {
    %c0_i32 = arith.constant 0 : i32
    %c0_i32_0 = arith.constant 0 : i32
    %c0_i32_1 = arith.constant 0 : i32
    return %c0_i32, %c0_i32_0 : i32, i32
  }
  func.func @transform_6(%arg0: i32) -> (i32, i32) {
    %c0_i32 = arith.constant 0 : i32
    %c0_i32_0 = arith.constant 0 : i32
    %c0_i32_1 = arith.constant 0 : i32
    return %c0_i32, %c0_i32_0 : i32, i32
  }
  func.func @transform_7(%arg0: i32) -> (i32, i32) {
    %c0_i32 = arith.constant 0 : i32
    %c0_i32_0 = arith.constant 0 : i32
    %c0_i32_1 = arith.constant 0 : i32
    return %c0_i32, %c0_i32_0 : i32, i32
  }
  func.func @transform_8(%arg0: i32) -> (i32, i32) {
    %c0_i32 = arith.constant 0 : i32
    %c0_i32_0 = arith.constant 0 : i32
    %c0_i32_1 = arith.constant 0 : i32
    return %c0_i32, %c0_i32_0 : i32, i32
  }
  func.func @transform_9(%arg0: i32) -> (i32, i32) {
    %c0_i32 = arith.constant 0 : i32
    %c0_i32_0 = arith.constant 0 : i32
    %c0_i32_1 = arith.constant 0 : i32
    return %c0_i32, %c0_i32_0 : i32, i32
  }
  func.func @transform_10(%arg0: i32) -> (i32, i32) {
    %c0_i32 = arith.constant 0 : i32
    %c0_i32_0 = arith.constant 0 : i32
    %c0_i32_1 = arith.constant 0 : i32
    return %c0_i32, %c0_i32_0 : i32, i32
  }
  func.func @transform_11(%arg0: i32) -> (i32, i32) {
    %c0_i32 = arith.constant 0 : i32
    %c0_i32_0 = arith.constant 0 : i32
    %c0_i32_1 = arith.constant 0 : i32
    return %c0_i32, %c0_i32_0 : i32, i32
  }
  func.func @transform_12(%arg0: i32) -> (i32, i32) {
    %c0_i32 = arith.constant 0 : i32
    %c0_i32_0 = arith.constant 0 : i32
    %c0_i32_1 = arith.constant 0 : i32
    return %c0_i32, %c0_i32_0 : i32, i32
  }
  func.func @transform_13(%arg0: i32) -> (i32, i32) {
    %c0_i32 = arith.constant 0 : i32
    %c0_i32_0 = arith.constant 0 : i32
    %c0_i32_1 = arith.constant 0 : i32
    return %c0_i32, %c0_i32_0 : i32, i32
  }
  func.func @transform_14(%arg0: i32) -> (i32, i32) {
    %c0_i32 = arith.constant 0 : i32
    %c0_i32_0 = arith.constant 0 : i32
    %c0_i32_1 = arith.constant 0 : i32
    return %c0_i32, %c0_i32_0 : i32, i32
  }
  func.func @transform_15(%arg0: i32) -> (i32, i32) {
    %c0_i32 = arith.constant 0 : i32
    %c0_i32_0 = arith.constant 0 : i32
    %c0_i32_1 = arith.constant 0 : i32
    return %c0_i32, %c0_i32_0 : i32, i32
  }
  func.func @transform_16(%arg0: i32) -> (i32, i32) {
    %c0_i32 = arith.constant 0 : i32
    %c0_i32_0 = arith.constant 0 : i32
    return %arg0, %c0_i32 : i32, i32
  }
  func.func @transform_17(%arg0: i32) -> (i32, i32) {
    %c0_i32 = arith.constant 0 : i32
    %c0_i32_0 = arith.constant 0 : i32
    return %arg0, %c0_i32 : i32, i32
  }
}

</mosaic_0001>

<bundles_post_ra>
// kernel: tpu_custom_call.1
= control target key start
LH: loop header
LB: loop body
LE: loop exit
PB: predicated region body
PF: predicated region fallthrough
CT: control target
= control target key end

     0   :  { %s1103_s0 = inlined_call_operand.vmem [shape: f32[24,16], index: 0, kind: input, shape index: {}]   ;;  %s1104_s1 = inlined_call_operand.vmem [shape: f32[24,16], index: 1, kind: input, shape index: {}]   ;;  %s1105_s2 = inlined_call_operand.vmem [shape: f32[24,8], index: 2, kind: input, shape index: {}]   ;;  %s1106_s3 = inlined_call_operand.vmem [shape: f32[24,3], index: 3, kind: input, shape index: {}]   ;;  %s1107_s4 = inlined_call_operand.vmem [shape: bf16[16,64], index: 4, kind: input, shape index: {}]   ;;  %s1108_s5 = inlined_call_operand.vmem [shape: bf16[16,64], index: 5, kind: input, shape index: {}]   ;;  %s1109_s6 = inlined_call_operand.vmem [shape: bf16[8,64], index: 6, kind: input, shape index: {}]   ;;  %s1110_s7 = inlined_call_operand.vmem [shape: f32[1,64], index: 7, kind: input, shape index: {}]   ;;  %s1111_s8 = inlined_call_operand.vmem [shape: bf16[64,32], index: 8, kind: input, shape index: {}]   ;;  %s1112_s9 = inlined_call_operand.vmem [shape: f32[1,32], index: 9, kind: input, shape index: {}]   ;;  %s1113_s10 = inlined_call_operand.vmem [shape: bf16[32,32], index: 10, kind: input, shape index: {}]   ;;  %s1114_s11 = inlined_call_operand.vmem [shape: f32[1,32], index: 11, kind: input, shape index: {}]   ;;  %s1115_s12 = inlined_call_operand.vmem [shape: f32[3,32], index: 12, kind: input, shape index: {}]   ;;  %s1116_s13 = inlined_call_operand.vmem [shape: f32[1,32], index: 13, kind: input, shape index: {}]   ;;  %s1117_s14 = inlined_call_operand.vmem [shape: f32[3,32], index: 14, kind: input, shape index: {}]   ;;  %s1118_s15 = inlined_call_operand.vmem [shape: f32[1,3], index: 15, kind: input, shape index: {}]   ;;  %s1119_s16 = inlined_call_operand.hbm [shape: f32[24,32], index: 16, kind: output, shape index: {0}]   ;;  %s1120_s17 = inlined_call_operand.vmem [shape: f32[24,3], index: 17, kind: output, shape index: {1}]  }
   0x1   :  { %1123 = sst [smem:[#allocation5_spill]] %s1103_s0 }
   0x2   :  { %1124 = sst [smem:[#allocation6_spill]] %s1104_s1 }
   0x3   :  { %v791_v0 = vld [vmem:[%s1108_s5] sm:$0xff]   ;;  %s1125_s0 = sld [smem:[#allocation6_spill]]  ;;  %vm83_vm0 = vcmask 130048   ;;  %s1126_s20 = sld [smem:[#allocation5_spill]]  ;;  %vm208_vm1 = vcmask 1043456   ;;  %v64_v14 = vld [vmem:[%s1105_s2 + $0x8] sm:$0xff] }
   0x4   :  { %v792_v1 = vld [vmem:[%s1107_s4] sm:$0xff]   ;;  %740 = vmatprep.subr.bf16.mxu0 %v791_v0  ;;  %vm201_vm2 = vcmask 64512   ;;  %v65_v17 = vld [vmem:[%s1105_s2 + $0x10] sm:$0xff] }
   0x5   :  { %746 = vmatprep.subr.bf16.mxu1 %v792_v1  ;;  %741 = vmatpush3.bf16.msra.mxu0 %v791_v0  ;;  %v200_v12 = vld [vmem:[%s1109_s6] sm:$0xf] }
   0x6   :  { %747 = vmatpush3.bf16.msra.mxu1 %v792_v1  ;;  %v63_v13 = vld [vmem:[%s1105_s2] sm:$0xff]  ;;  %778 = vmatprep.subr.msk.bf16.mxu0 %vm208_vm1, %v200_v12  ;;  %v210_v15 = vsel %vm208_vm1, %v200_v12, 0 }
   0x7   :  { %v198_v16 = vpack.c.bf16 %v64_v14, %v63_v13 }
   0x9   :  { %v60_v2 = vld [vmem:[%s1125_s0] sm:$0xff]  ;;  %v61_v3 = vld [vmem:[%s1125_s0 + $0x8] sm:$0xff]  ;;  %v62_v7 = vld [vmem:[%s1125_s0 + $0x10] sm:$0xff] }
   0xa   :  { %v57_v4 = vld [vmem:[%s1126_s20] sm:$0xff]  ;;  %v73_v5 = vpack.c.bf16 %v61_v3, %v60_v2  ;;  %v58_v6 = vld [vmem:[%s1126_s20 + $0x8] sm:$0xff]  ;;  %v59_v8 = vld [vmem:[%s1126_s20 + $0x10] sm:$0xff]  ;;  %v74_v10 = vpack.c.bf16 %v62_v7, %v62_v7 }
   0xb   :  { %v69_v9 = vpack.c.bf16 %v58_v6, %v57_v4  ;;  %v70_v11 = vpack.c.bf16 %v59_v8, %v59_v8 }
   0xc   :  { %742 = vmatprep.mubr.msk.bf16.mxu0 %vm83_vm0, %v73_v5 }
   0xd   :  { %748 = vmatprep.mubr.msk.bf16.mxu1 %vm83_vm0, %v69_v9  ;;  %743 = vmatmul.mubr.msk.bf16.vlgmr.msra.gmra.mrb[0].mxu0 %vm83_vm0, %v74_v10 }
   0xe   :  { %749 = vmatmul.mubr.msk.bf16.vlgmr.msra.gmra.mrb[0].mxu1 %vm83_vm0, %v70_v11  ;;  %753 = vmatpush3.bf16.msra.mxu0 %v210_v15 }
   0xf   :  { %754 = vmatprep.mubr.msk.bf16.mxu0 %vm201_vm2, %v198_v16 }
  0x10   :  { %23 = vsyncpa [#allocation3], 0  ;;  %v199_v18 = vpack.c.bf16 %v65_v17, %v65_v17  ;;  %v793_v19 = vld [vmem:[%s1111_s8] sm:$0xff]   ;;  %v794_v20 = vld [vmem:[%s1111_s8 + $0x8] sm:$0xff]   ;;  %v859_v25 = vmov 0   ;;  %v860_v27 = vmov 1   ;;  %v510_v4 = vlaneseq }
  0x11   :  { %758 = vmatprep.subr.bf16.mxu1 %v793_v19  ;;  %v795_v21 = vld [vmem:[%s1111_s8 + $0x10] sm:$0xff]   ;;  %v796_v22 = vld [vmem:[%s1111_s8 + $0x18] sm:$0xff]   ;;  %v66_v24 = vld [vmem:[%s1106_s3] sm:$0xff]  ;;  %786 = vset.pattern.permute.xlu1 %v859_v25  ;;  %v861_v28 = vmov 2   ;;  %vm335_vm3 = vcmask 523264   ;;  %vm436_vm4 = vcmask 261120  }
  0x12   :  { %759 = vmatpush3.bf16.msra.mxu1 %v793_v19  ;;  %v68_v23 = vld [vmem:[%s1106_s3 + $0x10] sm:$0xff]  ;;  %785 = vset.pattern.permute.xlu0 %v859_v25  ;;  %v67_v26 = vld [vmem:[%s1106_s3 + $0x8] sm:$0xff]  ;;  %v697_v41 = vld [vmem:[%s1110_s7] ss:$0 sm:$0xff]  ;;  %v1021_v5 = vshrl.u32 %v510_v4, 7  ;;  %vm619_vm5 = vcmask 7168  }
  0x13   :  { %760 = vmatprep.subr.bf16.mxu1 %v794_v20  ;;  %507 = vperm.xlu1 %786, %v68_v23   ;;  %v491_v9 = vld [vmem:[%s1115_s12] sm:$0x7]  ;;  %vm642_vm6 = vcmask 15368   ;;  %vm665_vm7 = vcmask 23568   ;;  %s862_s0 = smov [#allocation2]  }
  0x14   :  { %497 = vperm.xlu0 %785, %v66_v24   ;;  %v512_v8 = vsub.s32 0, %v1021_v5  ;;  %v540_v13 = vsub.s32 1, %v1021_v5  ;;  %v716_v15 = vld [vmem:[%s1116_s13] ss:$0 sm:$0xff]  ;;  %s674_s18 = sshll.u32 %s862_s0, 4  ;;  %s675_s18 = int_to_ptr.vmem [resolvable:$true] %s674_s18 }
  0x15   :  { %755 = vmatmul.mubr.msk.bf16.vlgmr.msra.gmra.mrb[4].mxu0 %vm201_vm2, %v199_v18  ;;  %p840_p1 = scmp.lt.s32.totalorder %s675_s18, %s675_s18 }
  0x16   :  { %761 = vmatpush3.bf16.msra.mxu1 %v794_v20  ;;  %v513_v10 = vrot.slane %v491_v9, %v512_v8  ;;  %v541_v17 = vrot.slane %v491_v9, %v540_v13 }
  0x17   :  { %762 = vmatprep.subr.bf16.mxu1 %v795_v21  ;;  %787 = vset.pattern.permute.xlu1 %v860_v27 }
  0x18   :  { %502 = vperm.xlu0 %785, %v67_v26   ;;  %527 = vperm.xlu1 %787, %v66_v24  }
  0x1a   :  { %763 = vmatpush3.bf16.msra.mxu1 %v795_v21 }
  0x1b   :  { %764 = vmatprep.subr.bf16.mxu1 %v796_v22 }
  0x1c   :  { %788 = vset.pattern.permute.xlu0 %v860_v27  ;;  %535 = vperm.xlu1 %787, %v68_v23  }
  0x1d   :  { %531 = vperm.xlu0 %788, %v67_v26  }
  0x1e   :  { %765 = vmatpush3.bf16.msra.mxu1 %v796_v22  ;;  %v562_v22 = vsub.s32 2, %v1021_v5 }
  0x20   :  { %789 = vset.pattern.permute.xlu1 %v861_v28 }
  0x21   :  { %790 = vset.pattern.permute.xlu0 %v861_v28  ;;  %549 = vperm.xlu1 %789, %v66_v24  }
  0x22   :  { %553 = vperm.xlu0 %790, %v67_v26   ;;  %v563_v26 = vrot.slane %v491_v9, %v562_v22 }
  0x25   :  { %557 = vperm.xlu1 %789, %v68_v23  }
  0x92   :  { %v508_v6 = vpop.permute.xlu1 %507 }
  0x93   :  { %v498_v7 = vpop.permute.xlu0 %497  ;;  %v516_v20 = vmul.f32 %v513_v10, %v508_v6 }
  0x94   :  { %v514_v16 = vmul.f32 %v513_v10, %v498_v7 }
  0x96   :  { %v523_v23 = vadd.f32 %v716_v15, %v514_v16  ;;  %v701_v16 = vld [vmem:[%s1112_s9] ss:$0 sm:$0xff] }
  0x97   :  { %v528_v11 = vpop.permute.xlu1 %527  ;;  %v503_v12 = vpop.permute.xlu0 %502 }
  0x98   :  { %v515_v14 = vmul.f32 %v513_v10, %v503_v12  ;;  %v542_v24 = vmul.f32 %v541_v17, %v528_v11 }
  0x9a   :  { %v524_v21 = vadd.f32 %v716_v15, %v515_v14 }
  0x9b   :  { %v536_v18 = vpop.permute.xlu1 %535 }
  0x9c   :  { %v532_v19 = vpop.permute.xlu0 %531 }
  0x9d   :  { %v543_v25 = vmul.f32 %v541_v17, %v532_v19 }
  0xa0   :  { %v550_v27 = vpop.permute.xlu1 %549 }
  0xa1   :  { %v554_v28 = vpop.permute.xlu0 %553 }
  0xe0   :  { %v744_v29 = vpop.f32.mrb[0].mxu0 }
  0xe1   :  { %v750_v30 = vpop.f32.mrb[0].mxu1  ;;  %v124_v31 = vpop.f32.mrb[1].mxu0 }
  0xe2   :  { %v193_v32 = vadd.f32 %v750_v30, %v744_v29  ;;  %v184_v33 = vpop.f32.mrb[1].mxu1  ;;  %v745_v34 = vpop.f32.mrb[2].mxu0  ;;  %v525_v29 = vadd.f32 %v716_v15, %v516_v20  ;;  %v546_v30 = vadd.f32 %v543_v25, %v524_v21 }
  0xe3   :  { %v185_v35 = vadd.f32 %v184_v33, %v124_v31  ;;  %v751_v36 = vpop.f32.mrb[2].mxu1  ;;  %v127_v37 = vpop.f32.mrb[3].mxu0  ;;  %v565_v31 = vmul.f32 %v563_v26, %v554_v28  ;;  %v544_v33 = vmul.f32 %v541_v17, %v536_v18 }
  0xe4   :  { %v187_v38 = vpop.f32.mrb[3].mxu1 }
  0xe5   :  { %v188_v39 = vadd.f32 %v187_v38, %v127_v37  ;;  %v568_v34 = vadd.f32 %v565_v31, %v546_v30  ;;  %v547_v36 = vadd.f32 %v544_v33, %v525_v29  ;;  %v564_v37 = vmul.f32 %v563_v26, %v550_v27 }
  0xe7   :  { %v718_v38 = vmul.f32 -1.442695, %v568_v34 }
  0xe8   :  { %v756_v40 = vpop.f32.mrb[4].mxu0 }
  0xe9   :  { %v262_v42 = vadd.f32 %v756_v40, %v193_v32  ;;  %v246_v43 = vpop.f32.mrb[5].mxu0  ;;  %v545_v32 = vadd.f32 %v542_v24, %v523_v23 }
  0xea   :  { %v260_v44 = vadd.f32 %v246_v43, %v185_v35  ;;  %v757_v45 = vpop.f32.mrb[6].mxu0  ;;  %v558_v35 = vpop.permute.xlu1 %557 }
  0xeb   :  { %v272_v46 = vadd.f32 %v697_v41, %v262_v42  ;;  %v249_v47 = vpop.f32.mrb[7].mxu0  ;;  %v567_v40 = vadd.f32 %v564_v37, %v545_v32 }
  0xec   :  { %v270_v48 = vadd.f32 %v697_v41, %v260_v44  ;;  %v261_v49 = vadd.f32 %v249_v47, %v188_v39  ;;  %v566_v39 = vmul.f32 %v563_v26, %v558_v35 }
  0xed   :  { %v700_v50 = vmul.f32 -1.442695, %v272_v46  ;;  %v717_v42 = vmul.f32 -1.442695, %v567_v40 }
  0xee   :  { %v698_v51 = vmul.f32 -1.442695, %v270_v48  ;;  %v271_v52 = vadd.f32 %v697_v41, %v261_v49  ;;  %v569_v41 = vadd.f32 %v566_v39, %v547_v36 }
  0xef   :  { %799 = vpow2.f32 %v700_v50 }
  0xf0   :  { %801 = vpow2.f32 %v698_v51  ;;  %v699_v53 = vmul.f32 -1.442695, %v271_v52  ;;  %v719_v43 = vmul.f32 -1.442695, %v569_v41  ;;  %v798_v51 = vld [vmem:[%s1113_s10 + $0x8] sm:$0xff]  }
  0xf2   :  { %803 = vpow2.f32 %v699_v53 }
  0xf9   :  { %v800_v54 = vpop.eup %799 }
  0xfa   :  { %v802_v55 = vpop.eup %801  ;;  %v284_v56 = vadd.f32 1.0, %v800_v54 }
  0xfb   :  { %v282_v57 = vadd.f32 1.0, %v802_v55 }
  0xfc   :  { %v804_v58 = vpop.eup %803  ;;  %805 = vrcp.f32 %v284_v56 }
  0xfd   :  { %807 = vrcp.f32 %v282_v57  ;;  %v283_v59 = vadd.f32 1.0, %v804_v58 }
  0xff   :  { %809 = vrcp.f32 %v283_v59 }
 0x100   :  { %811 = vpow2.f32 %v718_v38 }
 0x101   :  { %813 = vpow2.f32 %v717_v42 }
 0x102   :  { %815 = vpow2.f32 %v719_v43 }
 0x106   :  { %v806_v60 = vpop.eup %805 }
 0x107   :  { %v808_v61 = vpop.eup %807  ;;  %v293_v63 = vmul.f32 %v806_v60, %v272_v46  ;;  %v797_v46 = vld [vmem:[%s1113_s10] sm:$0xff]  }
 0x108   :  { %v291_v0 = vmul.f32 %v808_v61, %v270_v48  ;;  %770 = vmatprep.subr.bf16.mxu0 %v797_v46 }
 0x109   :  { %v810_v62 = vpop.eup %809  ;;  %v295_v3 = vpack.c.bf16 %v293_v63, %v293_v63  ;;  %771 = vmatpush3.bf16.msra.mxu0 %v797_v46 }
 0x10a   :  { %v292_v1 = vmul.f32 %v810_v62, %v271_v52  ;;  %v812_v44 = vpop.eup %811  ;;  %772 = vmatprep.subr.bf16.mxu0 %v798_v51  ;;  %v493_v52 = vld [vmem:[%s1117_s14] sm:$0x7] }
 0x10b   :  { %v580_v45 = vadd.f32 1.0, %v812_v44  ;;  %v814_v47 = vpop.eup %813  ;;  %v597_v54 = vrot.slane %v493_v52, %v512_v8  ;;  %v626_v57 = vrot.slane %v493_v52, %v540_v13 }
 0x10c   :  { %v294_v2 = vpack.c.bf16 %v292_v1, %v291_v0  ;;  %v816_v48 = vpop.eup %815  ;;  %v579_v49 = vadd.f32 1.0, %v814_v47 }
 0x10d   :  { %817 = vrcp.f32 %v580_v45  ;;  %v581_v50 = vadd.f32 1.0, %v816_v48  ;;  %773 = vmatpush3.bf16.msra.mxu0 %v798_v51 }
 0x10e   :  { %766 = vmatprep.mubr.msk.bf16.mxu1 %vm335_vm3, %v294_v2  ;;  %819 = vrcp.f32 %v579_v49 }
 0x10f   :  { %767 = vmatmul.mubr.msk.bf16.vlgmr.msra.gmra.mrb[4].mxu1 %vm335_vm3, %v295_v3  ;;  %821 = vrcp.f32 %v581_v50  ;;  %v649_v3 = vrot.slane %v493_v52, %v562_v22 }
 0x117   :  { %v818_v53 = vpop.eup %817 }
 0x118   :  { %v589_v55 = vmul.f32 %v818_v53, %v568_v34  ;;  %v820_v58 = vpop.eup %819 }
 0x119   :  { %v822_v59 = vpop.eup %821  ;;  %v588_v60 = vmul.f32 %v820_v58, %v567_v40 }
 0x11a   :  { %v599_v56 = vmul.f32 %v597_v54, %v589_v55  ;;  %v590_v62 = vmul.f32 %v822_v59, %v569_v41  ;;  %v628_v2 = vmul.f32 %v626_v57, %v589_v55  ;;  %v651_v11 = vmul.f32 %v649_v3, %v589_v55  ;;  %v720_v41 = vld [vmem:[%s1118_s15] ss:$0 sm:$0xff] }
 0x11b   :  { %v598_v63 = vmul.f32 %v597_v54, %v588_v60  ;;  %v627_v0 = vmul.f32 %v626_v57, %v588_v60  ;;  %v650_v9 = vmul.f32 %v649_v3, %v588_v60  ;;  %v711_v60 = vld [vmem:[%s1114_s11] ss:$0 sm:$0xff] }
 0x11c   :  { %v604_v61 = vsel %vm436_vm4, %v599_v56, 0.0  ;;  %v600_v1 = vmul.f32 %v597_v54, %v590_v62  ;;  %v629_v7 = vmul.f32 %v626_v57, %v590_v62  ;;  %v633_v8 = vsel %vm436_vm4, %v628_v2, 0.0 }
 0x11d   :  { %605 = vadd.xlane.f32.xlu0 %v604_v61  ;;  %v601_v4 = vsel %vm436_vm4, %v598_v63, 0.0  ;;  %v630_v6 = vsel %vm436_vm4, %v627_v0, 0.0  ;;  %v653_v12 = vsel %vm436_vm4, %v650_v9, 0.0  ;;  %v652_v13 = vmul.f32 %v649_v3, %v590_v62 }
 0x11e   :  { %602 = vadd.xlane.f32.xlu1 %v601_v4  ;;  %v607_v5 = vsel %vm436_vm4, %v600_v1, 0.0  ;;  %v636_v10 = vsel %vm436_vm4, %v629_v7, 0.0  ;;  %v656_v14 = vsel %vm436_vm4, %v651_v11, 0.0 }
 0x11f   :  { %v659_v15 = vsel %vm436_vm4, %v652_v13, 0.0 }
 0x121   :  { %608 = vadd.xlane.f32.xlu0 %v607_v5 }
 0x122   :  { %631 = vadd.xlane.f32.xlu1 %v630_v6 }
 0x125   :  { %634 = vadd.xlane.f32.xlu0 %v633_v8 }
 0x126   :  { %637 = vadd.xlane.f32.xlu1 %v636_v10 }
 0x129   :  { %654 = vadd.xlane.f32.xlu0 %v653_v12 }
 0x12a   :  { %657 = vadd.xlane.f32.xlu1 %v656_v14 }
 0x12d   :  { %660 = vadd.xlane.f32.xlu0 %v659_v15 }
 0x1aa   :  { %v606_v42 = vpop.xlane.xlu0 %605 }
 0x1ab   :  { %v617_v43 = vadd.f32 %v720_v41, %v606_v42  ;;  %v603_v44 = vpop.xlane.xlu1 %602 }
 0x1ac   :  { %v616_v45 = vadd.f32 %v720_v41, %v603_v44 }
 0x1ad   :  { %621 = vst.msk [vmem:[%s1120_s17 + $0x8] sm:$0xff] %vm619_vm5, %v617_v43 }
 0x1ae   :  { %v609_v46 = vpop.xlane.xlu0 %608  ;;  %620 = vst.msk [vmem:[%s1120_s17] sm:$0xff] %vm619_vm5, %v616_v45 }
 0x1af   :  { %v618_v47 = vadd.f32 %v720_v41, %v609_v46  ;;  %v632_v48 = vpop.xlane.xlu1 %631 }
 0x1b0   :  { %v639_v49 = vadd.f32 %v720_v41, %v632_v48 }
 0x1b1   :  { %622 = vst.msk [vmem:[%s1120_s17 + $0x10] sm:$0xff] %vm619_vm5, %v618_v47 }
 0x1b2   :  { %v635_v50 = vpop.xlane.xlu0 %634  ;;  %643 = vst.msk [vmem:[%s1120_s17] sm:$0xff] %vm642_vm6, %v639_v49 }
 0x1b3   :  { %v640_v51 = vadd.f32 %v720_v41, %v635_v50  ;;  %v638_v52 = vpop.xlane.xlu1 %637 }
 0x1b4   :  { %v641_v53 = vadd.f32 %v720_v41, %v638_v52 }
 0x1b5   :  { %644 = vst.msk [vmem:[%s1120_s17 + $0x8] sm:$0xff] %vm642_vm6, %v640_v51 }
 0x1b6   :  { %v655_v54 = vpop.xlane.xlu0 %654  ;;  %645 = vst.msk [vmem:[%s1120_s17 + $0x10] sm:$0xff] %vm642_vm6, %v641_v53 }
 0x1b7   :  { %v662_v55 = vadd.f32 %v720_v41, %v655_v54  ;;  %v658_v56 = vpop.xlane.xlu1 %657 }
 0x1b8   :  { %v663_v57 = vadd.f32 %v720_v41, %v658_v56 }
 0x1b9   :  { %666 = vst.msk [vmem:[%s1120_s17] sm:$0xff] %vm665_vm7, %v662_v55 }
 0x1ba   :  { %v661_v58 = vpop.xlane.xlu0 %660  ;;  %667 = vst.msk [vmem:[%s1120_s17 + $0x8] sm:$0xff] %vm665_vm7, %v663_v57 }
 0x1bb   :  { %v664_v59 = vadd.f32 %v720_v41, %v661_v58 }
 0x1bd   :  { %668 = vst.msk [vmem:[%s1120_s17 + $0x10] sm:$0xff] %vm665_vm7, %v664_v59  ;;  %s835_s17 = scalar_lea.vmem %s675_s18, 384 }
 0x1be   :  { %p836_p0 = scmp.ne.s32.totalorder %s675_s18, %s835_s17  ;;  %p841_p2 = scmp.lt.s32.totalorder %s835_s17, %s835_s17 }
 0x1c0   :  { %p842_p3 = por %p841_p2, %p840_p1 }
 0x1c2   :  { %p843_p4 = pnand %p842_p3, %p836_p0 }
 0x1e2   :  { %v768_v17 = vpop.f32.mrb[4].mxu1 }
 0x1e3   :  { %v385_v18 = vadd.f32 %v768_v17, %v701_v16  ;;  %v376_v19 = vpop.f32.mrb[5].mxu1 }
 0x1e4   :  { %v377_v20 = vadd.f32 %v701_v16, %v376_v19  ;;  %v769_v21 = vpop.f32.mrb[6].mxu1 }
 0x1e5   :  { %v710_v22 = vmul.f32 -1.442695, %v385_v18  ;;  %v379_v23 = vpop.f32.mrb[7].mxu1 }
 0x1e6   :  { %v708_v24 = vmul.f32 -1.442695, %v377_v20  ;;  %v380_v25 = vadd.f32 %v701_v16, %v379_v23 }
 0x1e7   :  { %823 = vpow2.f32 %v710_v22 }
 0x1e8   :  { %825 = vpow2.f32 %v708_v24  ;;  %v709_v26 = vmul.f32 -1.442695, %v380_v25 }
 0x1ea   :  { %827 = vpow2.f32 %v709_v26 }
 0x1f1   :  { %v824_v27 = vpop.eup %823 }
 0x1f2   :  { %v826_v28 = vpop.eup %825  ;;  %v401_v29 = vadd.f32 1.0, %v824_v27 }
 0x1f3   :  { %v399_v30 = vadd.f32 1.0, %v826_v28 }
 0x1f4   :  { %v828_v31 = vpop.eup %827  ;;  %829 = vrcp.f32 %v401_v29 }
 0x1f5   :  { %831 = vrcp.f32 %v399_v30  ;;  %v400_v32 = vadd.f32 1.0, %v828_v31 }
 0x1f7   :  { %833 = vrcp.f32 %v400_v32 }
 0x1fe   :  { %v830_v33 = vpop.eup %829 }
 0x1ff   :  { %v832_v34 = vpop.eup %831  ;;  %v410_v36 = vmul.f32 %v830_v33, %v385_v18 }
 0x200   :  { %v408_v37 = vmul.f32 %v832_v34, %v377_v20 }
 0x201   :  { %v834_v35 = vpop.eup %833  ;;  %v412_v40 = vpack.c.bf16 %v410_v36, %v410_v36 }
 0x202   :  { %v409_v38 = vmul.f32 %v834_v35, %v380_v25 }
 0x204   :  { %v411_v39 = vpack.c.bf16 %v409_v38, %v408_v37 }
 0x206   :  { %774 = vmatprep.mubr.msk.bf16.mxu0 %vm436_vm4, %v411_v39 }
 0x207   :  { %775 = vmatmul.mubr.msk.bf16.vlgmr.msra.gmra.mrb[8].mxu0 %vm436_vm4, %v412_v40 }
 0x2da   :  { %v776_v61 = vpop.f32.mrb[8].mxu0 }
 0x2db   :  { %v486_v62 = vadd.f32 %v776_v61, %v711_v60  ;;  %v477_v63 = vpop.f32.mrb[9].mxu0 }
 0x2dc   :  { %v478_v0 = vadd.f32 %v711_v60, %v477_v63  ;;  %v777_v1 = vpop.f32.mrb[10].mxu0 }
 0x2dd   :  { %593 = vst.msk [vmem:[#allocation2 + $0x10] sm:$0xff] %vm436_vm4, %v486_v62  ;;  %v480_v2 = vpop.f32.mrb[11].mxu0 }
 0x2de   :  { %591 = vst.msk [vmem:[#allocation2] sm:$0xff] %vm436_vm4, %v478_v0  ;;  %v481_v3 = vadd.f32 %v711_v60, %v480_v2 }
 0x2e0   :  { %592 = vst.msk [vmem:[#allocation2 + $0x8] sm:$0xff] %vm436_vm4, %v481_v3 }
 0x2e1   :  { %846 = shalt.err (!%p843_p4)
}
 0x2e2   :  { %s847_s19 = scalar_lea.hbm %s1119_s16, 384 }
 0x2e3   :  { %p848_p5 = scmp.ne.s32.totalorder %s1119_s16, %s847_s19  ;;  %p851_p6 = scmp.lt.u32.totalorder %s847_s19, %s1119_s16 }
 0x2e5   :  { %p853_p7 = pnand %p851_p6, %p848_p5 }
 0x2e7   :  { %856 = shalt.err (!%p853_p7)
}
 0x2e8   :  { %s863_s20 = smov 128   ;;  %s864_s2 = smov 8  }
 0x2e9   :  { %680 = dma.vmem_to_hbm [thread:$0]  %s675_s18, 384, %s1119_s16, [#allocation3], %s863_s20, %s863_s20, %s864_s2  }
 0x2ea   :  { %857 = dma.done.wait [#allocation3], 384  }
 0x2eb   :  { %858 = vsyncadd [#allocation3], 4294966912 }
 0x2ec   :  { %688 = vsyncpa [#allocation3], 1 }

</bundles_post_ra>
